<compile_context>
chip_gen: v5e
topology: v5e:2x2
jax: 0.10.0
libtpu: 0.0.40
codegen_flags: <defaults>
</compile_context>

<pallas_src>
import jax
import jax.numpy as jnp
from jax.experimental import pallas as pl
from jax.experimental.pallas import tpu as pltpu

IGNORE = -1.0
POS_WEIGHT = (1.0, 1.0, 1.0, 1.0, 1.0, 1.0, 1.0, 3.0, 3.0, 3.0, 1.0, 2.0)
C = len(POS_WEIGHT)  # 12


def _au_loss_kernel(pw_ref, yp_ref, yt_ref, out_ref, sum_acc, cnt_acc):
    i = pl.program_id(0)

    @pl.when(i == 0)
    def _init():
        sum_acc[...] = jnp.zeros_like(sum_acc)
        cnt_acc[...] = jnp.zeros_like(cnt_acc)

    # Upcast in-kernel; inputs stay in their native dtype in HBM.
    x = yp_ref[...].astype(jnp.float32)      # (C, T) logits
    y = yt_ref[...].astype(jnp.float32)      # (C, T) targets

    # Per-sample validity: column 0 of the original (N, C) layout == sublane row 0 here.
    # Padded samples carry IGNORE in row 0, so they are masked out automatically.
    valid = (yt_ref[0:1, :].astype(jnp.float32) != IGNORE).astype(jnp.float32)  # (1, T)

    # pos_weight comes in as a (C, 1) input; broadcasts over lanes.
    pw = pw_ref[...].astype(jnp.float32)     # (C, 1)
    pwm1 = pw - 1.0

    # BCEWithLogits(reduction='none', pos_weight=pw):
    #   l = pw*y*softplus(-x) + (1-y)*softplus(x)
    # with softplus(-x) = softplus(x) - x:
    #   l = softplus(x) * (1 + (pw-1)*y) - pw*y*x
    sp = jnp.maximum(x, 0.0) + jnp.log1p(jnp.exp(-jnp.abs(x)))   # stable softplus(x)
    elem = sp * (1.0 + pwm1 * y) - (pw * y) * x                  # (C, T)

    # Vector partial accumulation; validity mask broadcasts over the C sublanes.
    sum_acc[...] += elem * valid
    cnt_acc[...] += valid

    @pl.when(i == pl.num_programs(0) - 1)
    def _finalize():
        total = jnp.sum(sum_acc[...])
        n_valid = jnp.sum(cnt_acc[...])
        # NOTE: if every sample is ignored this divides by zero -> NaN, matching the
        # PyTorch masked-mean behaviour.
        out_ref[0, 0] = total / (n_valid * jnp.float32(C))


def au_loss(y_pred, y_true, *, tile_n=2048):
    """y_pred: (N, 12) logits, y_true: (N, 12) targets (IGNORE sentinel in column 0 marks
    invalid samples).  Inputs may be any float dtype.  Returns a scalar f32 loss."""
    assert y_pred.shape == y_true.shape and y_pred.shape[1] == C
    n = y_pred.shape[0]

    # Lane-dense layout: (N, C) -> (C, N_pad); N maps onto the 128-wide lane axis.
    tile = min(tile_n, ((n + 127) // 128) * 128)          # multiple of 128, >= 128
    n_pad = pl.cdiv(n, tile) * tile
    yp_t = y_pred.T
    yt_t = y_true.T
    if n_pad != n:
        # Pad with IGNORE targets (excluded by the validity mask) and zero logits
        # (keeps softplus finite); no in-kernel tail masking needed.
        yp_t = jnp.pad(yp_t, ((0, 0), (0, n_pad - n)), constant_values=0.0)
        yt_t = jnp.pad(yt_t, ((0, 0), (0, n_pad - n)), constant_values=IGNORE)

    pw = jnp.asarray(POS_WEIGHT, dtype=jnp.float32).reshape(C, 1)

    grid = (n_pad // tile,)
    itemsize = jnp.dtype(y_pred.dtype).itemsize
    cost = pl.CostEstimate(
        flops=8 * n_pad * C,
        transcendentals=2 * n_pad * C,
        bytes_accessed=2 * n_pad * C * itemsize,
    )

    out = pl.pallas_call(
        _au_loss_kernel,
        out_shape=jax.ShapeDtypeStruct((1, 1), jnp.float32),
        grid=grid,
        in_specs=[
            pl.BlockSpec((C, 1), lambda i: (0, 0)),       # pos_weight (constant block)
            pl.BlockSpec((C, tile), lambda i: (0, i)),    # logits tile
            pl.BlockSpec((C, tile), lambda i: (0, i)),    # targets tile
        ],
        out_specs=pl.BlockSpec(memory_space=pltpu.MemorySpace.SMEM),
        scratch_shapes=[
            pltpu.VMEM((C, tile), jnp.float32),   # masked BCE partial sums
            pltpu.VMEM((1, tile), jnp.float32),   # valid-sample partial counts
        ],
        compiler_params=pltpu.CompilerParams(
            dimension_semantics=("arbitrary",),   # reduction axis over N tiles
        ),
        cost_estimate=cost,
    )(pw, yp_t, yt_t)
    return out[0, 0]


def au_loss_ref(y_pred, y_true):
    """Pure-JAX reference mirroring the PyTorch forward."""
    pw = jnp.asarray(POS_WEIGHT, dtype=jnp.float32)
    valid = (y_true[:, 0].astype(jnp.float32) != IGNORE).astype(jnp.float32)[:, None]
    x = y_pred.astype(jnp.float32)
    y = y_true.astype(jnp.float32)
    sp_pos = jnp.maximum(x, 0.0) + jnp.log1p(jnp.exp(-jnp.abs(x)))   # softplus(x)
    sp_neg = sp_pos - x                                              # softplus(-x)
    elem = pw[None, :] * y * sp_neg + (1.0 - y) * sp_pos
    return jnp.sum(elem * valid) / (jnp.sum(valid) * y.shape[1])


if __name__ == "__main__":
    key = jax.random.PRNGKey(0)
    k1, k2 = jax.random.split(key)
    N = 8
    y_pred = jax.random.normal(k1, (N, C), dtype=jnp.float32)
    # binary targets in {0, 1}
    y_true = jax.random.bernoulli(k2, 0.5, (N, C)).astype(jnp.float32)
    # mark two samples as ignored (column 0 carries the sample-validity flag)
    y_true = y_true.at[1, 0].set(IGNORE)
    y_true = y_true.at[5, 0].set(IGNORE)

    loss = jax.block_until_ready(au_loss(y_pred, y_true))
    ref = jax.block_until_ready(au_loss_ref(y_pred, y_true))
    assert jnp.allclose(loss, ref, rtol=1e-5, atol=1e-5), (loss, ref)
    print("KERNEL_OK")
</pallas_src>

<mosaic_0001>
module attributes {stable_mosaic.version = 11 : i64} {
  func.func @_au_loss_kernel(%arg0: i32, %arg1: memref<12x1xf32, #tpu.memory_space<vmem>>, %arg2: memref<12x128xf32, #tpu.memory_space<vmem>>, %arg3: memref<12x128xf32, #tpu.memory_space<vmem>>, %arg4: memref<1x1xf32, #tpu.memory_space<smem>>, %arg5: memref<12x128xf32, #tpu.memory_space<vmem>>, %arg6: memref<1x128xf32, #tpu.memory_space<vmem>>) attributes {dimension_semantics = [#tpu.dimension_semantics<arbitrary>], iteration_bounds = array<i64: 1>, scalar_prefetch = 0 : i64, scratch_operands = 2 : i64, tpu.core_type = #tpu.core_type<tc>, window_params = [{pipeline_mode = #tpu.pipeline_mode<synchronous>, transform_indices = @transform_0, window_bounds = array<i64: 12, 1>}, {transform_indices = @transform_1, window_bounds = array<i64: 12, 128>}, {transform_indices = @transform_2, window_bounds = array<i64: 12, 128>}, {transform_indices = @transform_3, window_bounds = array<i64: 1, 1>}]} {
    %c0_i32 = arith.constant 0 : i32
    %0 = arith.cmpi eq, %arg0, %c0_i32 : i32
    %1 = arith.extui %0 : i1 to i32
    %c0_i32_0 = arith.constant 0 : i32
    %2 = arith.cmpi ne, %1, %c0_i32_0 : i32
    scf.if %2 {
      %cst_22 = arith.constant 0.000000e+00 : f32
      %41 = vector.broadcast %cst_22 : f32 to vector<12x128xf32>
      %c0_23 = arith.constant 0 : index
      %c0_24 = arith.constant 0 : index
      %42 = vector.load %arg5[%c0_23, %c0_24] : memref<12x128xf32, #tpu.memory_space<vmem>>, vector<12x128xf32>
      tpu.vector_store %arg5[%c0_23, %c0_24], %41 {strides = array<i32>} : memref<12x128xf32, #tpu.memory_space<vmem>>, vector<12x128xf32>,
      %cst_25 = arith.constant 0.000000e+00 : f32
      %43 = vector.broadcast %cst_25 : f32 to vector<1x128xf32>
      %c0_26 = arith.constant 0 : index
      %c0_27 = arith.constant 0 : index
      %44 = vector.load %arg6[%c0_26, %c0_27] : memref<1x128xf32, #tpu.memory_space<vmem>>, vector<1x128xf32>
      tpu.vector_store %arg6[%c0_26, %c0_27], %43 {strides = array<i32>} : memref<1x128xf32, #tpu.memory_space<vmem>>, vector<1x128xf32>,
    } else {
    }
    %c0 = arith.constant 0 : index
    %c0_1 = arith.constant 0 : index
    %3 = vector.load %arg2[%c0, %c0_1] : memref<12x128xf32, #tpu.memory_space<vmem>>, vector<12x128xf32>
    %c0_2 = arith.constant 0 : index
    %c0_3 = arith.constant 0 : index
    %4 = vector.load %arg3[%c0_2, %c0_3] : memref<12x128xf32, #tpu.memory_space<vmem>>, vector<12x128xf32>
    %c0_4 = arith.constant 0 : index
    %c0_5 = arith.constant 0 : index
    %5 = vector.load %arg3[%c0_4, %c0_5] : memref<12x128xf32, #tpu.memory_space<vmem>>, vector<1x128xf32>
    %cst = arith.constant -1.000000e+00 : f32
    %6 = vector.broadcast %cst : f32 to vector<1x128xf32>
    %7 = arith.cmpf one, %5, %6 : vector<1x128xf32>
    %8 = arith.extui %7 : vector<1x128xi1> to vector<1x128xi32>
    %9 = arith.sitofp %8 : vector<1x128xi32> to vector<1x128xf32>
    %c0_6 = arith.constant 0 : index
    %c0_7 = arith.constant 0 : index
    %10 = vector.load %arg1[%c0_6, %c0_7] : memref<12x1xf32, #tpu.memory_space<vmem>>, vector<12x1xf32>
    %cst_8 = arith.constant 1.000000e+00 : f32
    %11 = vector.broadcast %cst_8 : f32 to vector<12x1xf32>
    %12 = arith.subf %10, %11 : vector<12x1xf32>
    %cst_9 = arith.constant 0.000000e+00 : f32
    %13 = vector.broadcast %cst_9 : f32 to vector<12x128xf32>
    %14 = arith.maximumf %3, %13 : vector<12x128xf32>
    %15 = math.absf %3 : vector<12x128xf32>
    %cst_10 = arith.constant 0.000000e+00 : f32
    %16 = vector.broadcast %cst_10 : f32 to vector<12x128xf32>
    %17 = arith.subf %16, %15 : vector<12x128xf32>
    %18 = math.exp %17 : vector<12x128xf32>
    %19 = math.log1p %18 : vector<12x128xf32>
    %20 = arith.addf %14, %19 : vector<12x128xf32>
    %21 = vector.broadcast %12 : vector<12x1xf32> to vector<12x128xf32>
    %22 = arith.mulf %21, %4 : vector<12x128xf32>
    %cst_11 = arith.constant 1.000000e+00 : f32
    %23 = vector.broadcast %cst_11 : f32 to vector<12x128xf32>
    %24 = arith.addf %23, %22 : vector<12x128xf32>
    %25 = arith.mulf %20, %24 : vector<12x128xf32>
    %26 = vector.broadcast %10 : vector<12x1xf32> to vector<12x128xf32>
    %27 = arith.mulf %26, %4 : vector<12x128xf32>
    %28 = arith.mulf %27, %3 : vector<12x128xf32>
    %29 = arith.subf %25, %28 : vector<12x128xf32>
    %c0_12 = arith.constant 0 : index
    %c0_13 = arith.constant 0 : index
    %30 = vector.load %arg5[%c0_12, %c0_13] : memref<12x128xf32, #tpu.memory_space<vmem>>, vector<12x128xf32>
    %31 = vector.broadcast %9 : vector<1x128xf32> to vector<12x128xf32>
    %32 = arith.mulf %29, %31 : vector<12x128xf32>
    %33 = arith.addf %30, %32 : vector<12x128xf32>
    %c0_14 = arith.constant 0 : index
    %c0_15 = arith.constant 0 : index
    %34 = vector.load %arg5[%c0_14, %c0_15] : memref<12x128xf32, #tpu.memory_space<vmem>>, vector<12x128xf32>
    tpu.vector_store %arg5[%c0_14, %c0_15], %33 {strides = array<i32>} : memref<12x128xf32, #tpu.memory_space<vmem>>, vector<12x128xf32>,
    %c0_16 = arith.constant 0 : index
    %c0_17 = arith.constant 0 : index
    %35 = vector.load %arg6[%c0_16, %c0_17] : memref<1x128xf32, #tpu.memory_space<vmem>>, vector<1x128xf32>
    %36 = arith.addf %35, %9 : vector<1x128xf32>
    %c0_18 = arith.constant 0 : index
    %c0_19 = arith.constant 0 : index
    %37 = vector.load %arg6[%c0_18, %c0_19] : memref<1x128xf32, #tpu.memory_space<vmem>>, vector<1x128xf32>
    tpu.vector_store %arg6[%c0_18, %c0_19], %36 {strides = array<i32>} : memref<1x128xf32, #tpu.memory_space<vmem>>, vector<1x128xf32>,
    %c0_i32_20 = arith.constant 0 : i32
    %38 = arith.cmpi eq, %arg0, %c0_i32_20 : i32
    %39 = arith.extui %38 : i1 to i32
    %c0_i32_21 = arith.constant 0 : i32
    %40 = arith.cmpi ne, %39, %c0_i32_21 : i32
    scf.if %40 {
      %c0_22 = arith.constant 0 : index
      %c0_23 = arith.constant 0 : index
      %41 = vector.load %arg5[%c0_22, %c0_23] : memref<12x128xf32, #tpu.memory_space<vmem>>, vector<12x128xf32>
      %42 = vector.shape_cast %41 : vector<12x128xf32> to vector<1x12x128xf32>
      %cst_24 = arith.constant dense<0.000000e+00> : vector<1xf32>
      %43 = vector.multi_reduction <add>, %42, %cst_24 [1, 2] : vector<1x12x128xf32> to vector<1xf32>
      %44 = vector.shape_cast %43 : vector<1xf32> to vector<1x1x1xf32>
      %45 = vector.extract %44[0, 0, 0] : f32 from vector<1x1x1xf32>
      %c0_25 = arith.constant 0 : index
      %c0_26 = arith.constant 0 : index
      %46 = vector.load %arg6[%c0_25, %c0_26] : memref<1x128xf32, #tpu.memory_space<vmem>>, vector<1x128xf32>
      %47 = vector.shape_cast %46 : vector<1x128xf32> to vector<1x1x128xf32>
      %cst_27 = arith.constant dense<0.000000e+00> : vector<1xf32>
      %48 = vector.multi_reduction <add>, %47, %cst_27 [1, 2] : vector<1x1x128xf32> to vector<1xf32>
      %49 = vector.shape_cast %48 : vector<1xf32> to vector<1x1x1xf32>
      %50 = vector.extract %49[0, 0, 0] : f32 from vector<1x1x1xf32>
      %cst_28 = arith.constant 1.200000e+01 : f32
      %51 = arith.mulf %50, %cst_28 : f32
      %52 = arith.divf %45, %51 : f32
      %c0_29 = arith.constant 0 : index
      %c0_30 = arith.constant 0 : index
      %53 = memref.load %arg4[%c0_29, %c0_30] : memref<1x1xf32, #tpu.memory_space<smem>>
      memref.store %52, %arg4[%c0_29, %c0_30] : memref<1x1xf32, #tpu.memory_space<smem>>
    } else {
    }
    return
  }
  func.func @transform_0(%arg0: i32) -> (i32, i32) {
    %c0_i32 = arith.constant 0 : i32
    %c0_i32_0 = arith.constant 0 : i32
    %c0_i32_1 = arith.constant 0 : i32
    return %c0_i32, %c0_i32_0 : i32, i32
  }
  func.func @transform_1(%arg0: i32) -> (i32, i32) {
    %c0_i32 = arith.constant 0 : i32
    %c0_i32_0 = arith.constant 0 : i32
    return %c0_i32, %arg0 : i32, i32
  }
  func.func @transform_2(%arg0: i32) -> (i32, i32) {
    %c0_i32 = arith.constant 0 : i32
    %c0_i32_0 = arith.constant 0 : i32
    return %c0_i32, %arg0 : i32, i32
  }
  func.func @transform_3(%arg0: i32) -> (i32, i32) {
    %c0_i32 = arith.constant 0 : i32
    %c0_i32_0 = arith.constant 0 : i32
    %c0_i32_1 = arith.constant 0 : i32
    return %c0_i32, %c0_i32_0 : i32, i32
  }
}

</mosaic_0001>

<bundles_post_ra>
// kernel: tpu_custom_call.1
= control target key start
LH: loop header
LB: loop body
LE: loop exit
PB: predicated region body
PF: predicated region fallthrough
CT: control target
= control target key end

     0   :  { %8 = vsyncpa [#allocation5], 0  ;;  %s300_s0 = inlined_call_operand.vmem [shape: f32[12,1], index: 0, kind: input, shape index: {}]   ;;  %s301_s1 = inlined_call_operand.vmem [shape: f32[12,128], index: 1, kind: input, shape index: {}]   ;;  %s302_s2 = inlined_call_operand.hbm [shape: f32[12,128], index: 2, kind: input, shape index: {}]   ;;  %s303_s3 = inlined_call_operand.hbm [shape: f32[1,1], index: 3, kind: output, shape index: {}]  }
   0x1   :  { %9 = vsyncpa [#allocation6], 0  ;;  %s18_s14 = sshll.u32 %s302_s2, 4  ;;  %s256_s15 = smov [#allocation4]   ;;  %s19_s14 = int_to_ptr.hbm [resolvable:$true] %s18_s14 }
   0x2   :  { %s20_s16 = sshll.u32 %s256_s15, 4  ;;  %s257_s17 = smov 128   ;;  %s21_s16 = int_to_ptr.vmem [resolvable:$true] %s20_s16 }
   0x3   :  { %s258_s18 = smov 8  }
   0x4   :  { %26 = dma.hbm_to_vmem [thread:$0]  %s19_s14, 256, %s21_s16, [#allocation5], %s257_s17, %s257_s17, %s258_s18  }
   0x5   :  { %252 = dma.done.wait [#allocation5], 256  }
   0x6   :  { %253 = vsyncadd [#allocation5], 4294967040  ;;  %v259_v0 = vmov 0   ;;  %v47_v1 = vld [vmem:[%s300_s0 + $0x8] sm:$0xf]  ;;  %v46_v3 = vld [vmem:[%s300_s0] sm:$0xff] }
   0x7   :  { %205 = vset.pattern.permute.xlu1 %v259_v0  ;;  %204 = vset.pattern.permute.xlu0 %v259_v0  ;;  %v191_v2 = vadd.f32 -1.0, %v47_v1  ;;  %v190_v4 = vadd.f32 -1.0, %v46_v3  ;;  %v39_v5 = vld [vmem:[%s301_s1 + $0x8] sm:$0xf]  ;;  %v38_v8 = vld [vmem:[%s301_s1] sm:$0xff]  ;;  %v260_v11 = vmov 0.0  }
   0x8   :  { %103 = vperm.xlu1 %205, %v47_v1   ;;  %v53_v6 = vand.u32 2147483647, %v39_v5  ;;  %v52_v10 = vand.u32 2147483647, %v38_v8  ;;  %36 = vst [vmem:[#allocation2 + $0x8] sm:$0xf] %v260_v11 }
   0x9   :  { %87 = vperm.xlu0 %204, %v191_v2   ;;  %37 = vst [vmem:[#allocation3] sm:$0x1] %v260_v11  ;;  %v42_v13 = vld [vmem:[#allocation4] sm:$0x1]  ;;  %v51_v29 = vmax.f32 %v39_v5, 0.0  ;;  %v50_v46 = vmax.f32 %v38_v8, 0.0 }
   0xa   :  { %v55_v7 = vsub.f32 0.0, %v53_v6  ;;  %v54_v12 = vsub.f32 0.0, %v52_v10  ;;  %vm43_vm0 = vcmp.ne.f32.partialorder %v42_v13, -1.0  ;;  %v41_v31 = vld [vmem:[#allocation4 + $0x8] sm:$0xf]  ;;  %v40_v48 = vld [vmem:[#allocation4] sm:$0xff] }
   0xb   :  { %v189_v16 = vsel %vm43_vm0, 1.0, %v260_v11  ;;  %vm129_vm3 = vcmask 1043456   ;;  %vm142_vm4 = vcmask 1040384   ;;  %s178_s29 = sshll.u32 %s303_s3, 4  ;;  %s261_s5 = smov [#allocation7]   ;;  %s179_s29 = int_to_ptr.hbm [resolvable:$true] %s178_s29 }
   0xc   :  { %v58_v9 = vmul.f32 1.442695, %v55_v7  ;;  %v56_v14 = vmul.f32 1.442695, %v54_v12  ;;  %v114_v45 = vperm.slane %v189_v16, 0 }
   0xe   :  { %206 = vpow2.f32 %v58_v9 }
   0xf   :  { %208 = vpow2.f32 %v56_v14  ;;  %v113_v51 = vld [vmem:[#allocation2 + $0x8] sm:$0xf] }
  0x10   :  { %98 = vperm.xlu1 %205, %v46_v3   ;;  %v121_v18 = vld [vmem:[#allocation3] sm:$0x1] }
  0x11   :  { %82 = vperm.xlu0 %204, %v190_v4   ;;  %v122_v19 = vadd.f32 %v189_v16, %v121_v18 }
  0x13   :  { %123 = vst [vmem:[#allocation3] sm:$0x1] %v122_v19 }
  0x14   :  { %v207_v15 = vpop.eup %206 }
  0x15   :  { %v69_v17 = vadd.f32 1.0, %v207_v15  ;;  %v209_v20 = vpop.eup %208  ;;  %v72_v21 = vmul.f32 -0.5, %v207_v15  ;;  %v75_v25 = vand.u32 2147483647, %v207_v15 }
  0x16   :  { %v60_v22 = vadd.f32 1.0, %v209_v20  ;;  %v63_v28 = vmul.f32 -0.5, %v209_v20  ;;  %v66_v36 = vand.u32 2147483647, %v209_v20 }
  0x17   :  { %210 = vlog2.f32 %v69_v17  ;;  %v73_v23 = vadd.f32 1.0, %v72_v21  ;;  %vm76_vm1 = vcmp.lt.f32.partialorder %v75_v25, 0.0004427343 }
  0x18   :  { %212 = vlog2.f32 %v60_v22  ;;  %v64_v33 = vadd.f32 1.0, %v63_v28  ;;  %vm67_vm2 = vcmp.lt.f32.partialorder %v66_v36, 0.0004427343 }
  0x19   :  { %v74_v27 = vmul.f32 %v207_v15, %v73_v23 }
  0x1a   :  { %v65_v41 = vmul.f32 %v209_v20, %v64_v33  ;;  %v141_v2 = vld [vmem:[#allocation3] sm:$0x1] }
  0x1b   :  { %v143_v3 = vsel %vm142_vm4, %v141_v2, 0.0 }
  0x1d   :  { %v211_v24 = vpop.eup %210 }
  0x1e   :  { %v71_v26 = vmul.f32 0.6931472, %v211_v24  ;;  %v213_v34 = vpop.eup %212 }
  0x1f   :  { %v62_v40 = vmul.f32 0.6931472, %v213_v34 }
  0x20   :  { %v77_v32 = vsel %vm76_vm1, %v74_v27, %v71_v26 }
  0x21   :  { %v79_v38 = vadd.f32 %v77_v32, %v51_v29  ;;  %v68_v49 = vsel %vm67_vm2, %v65_v41, %v62_v40 }
  0x22   :  { %v78_v55 = vadd.f32 %v68_v49, %v50_v46 }
  0x7a   :  { %v104_v30 = vpop.permute.xlu1 %103 }
  0x7b   :  { %v107_v35 = vmul.f32 %v104_v30, %v41_v31  ;;  %v88_v37 = vpop.permute.xlu0 %87 }
  0x7c   :  { %v91_v39 = vmul.f32 %v88_v37, %v41_v31 }
  0x7d   :  { %v109_v42 = vmul.f32 %v107_v35, %v39_v5 }
  0x7e   :  { %v93_v43 = vadd.f32 1.0, %v91_v39 }
  0x80   :  { %v95_v44 = vmul.f32 %v93_v43, %v79_v38 }
  0x82   :  { %v99_v47 = vpop.permute.xlu1 %98  ;;  %v111_v50 = vsub.f32 %v95_v44, %v109_v42 }
  0x83   :  { %v83_v52 = vpop.permute.xlu0 %82  ;;  %v106_v54 = vmul.f32 %v99_v47, %v40_v48 }
  0x84   :  { %v116_v53 = vmul.f32 %v114_v45, %v111_v50  ;;  %v90_v56 = vmul.f32 %v83_v52, %v40_v48 }
  0x85   :  { %v108_v59 = vmul.f32 %v106_v54, %v38_v8 }
  0x86   :  { %v118_v57 = vadd.f32 %v116_v53, %v113_v51  ;;  %v92_v58 = vadd.f32 1.0, %v90_v56 }
  0x88   :  { %120 = vst [vmem:[#allocation2 + $0x8] sm:$0xf] %v118_v57  ;;  %v94_v60 = vmul.f32 %v92_v58, %v78_v55 }
  0x8a   :  { %v110_v61 = vsub.f32 %v94_v60, %v108_v59 }
  0x8c   :  { %v115_v62 = vmul.f32 %v114_v45, %v110_v61 }
  0x8f   :  { %v128_v63 = vld [vmem:[#allocation2 + $0x8] sm:$0xf] }
  0x90   :  { %v130_v0 = vsel %vm129_vm3, %v128_v63, 0.0 }
  0x91   :  { %v131_v1 = vadd.f32 %v130_v0, %v115_v62 }
  0x93   :  { %132 = vadd.xlane.f32.xlu2 %v131_v1 }
  0x9b   :  { %144 = vadd.xlane.f32.xlu2 %v143_v3 }
 0x106   :  { %v133_v4 = vpop.xlane.xlu2 %132 }
 0x107   :  { %v134_v5 = vrot.slane %v133_v4, 4 }
 0x109   :  { %v135_v6 = vadd.f32 %v134_v5, %v133_v4 }
 0x10b   :  { %v136_v7 = vrot.slane %v135_v6, 2 }
 0x10d   :  { %v137_v9 = vadd.f32 %v136_v7, %v135_v6 }
 0x10e   :  { %v145_v10 = vpop.xlane.xlu2 %144 }
 0x10f   :  { %v146_v11 = vrot.slane %v145_v10, 4  ;;  %v138_v8 = vrot.slane %v137_v9, 1 }
 0x111   :  { %v147_v12 = vadd.f32 %v146_v11, %v145_v10  ;;  %v139_v13 = vadd.f32 %v138_v8, %v137_v9 }
 0x113   :  { %v148_v14 = vrot.slane %v147_v12, 2  ;;  %192 = vpush %v139_v13 }
 0x115   :  { %v149_v15 = vadd.f32 %v148_v14, %v147_v12 }
 0x117   :  { %v150_v16 = vrot.slane %v149_v15, 1 }
 0x119   :  { %v151_v17 = vadd.f32 %v150_v16, %v149_v15 }
 0x11b   :  { %194 = vpush %v151_v17 }
 0x144   :  { %s193_s0 = spop %192 }
 0x14c   :  { %s195_s1 = spop %194 }
 0x14d   :  { %s153_s26 = smul.f32 12.0, %s195_s1 }
 0x14f   :  { %v154_v18 = vstv %s153_s26 }
 0x150   :  { %214 = vrcp.f32 %v154_v18  ;;  %v166_v22 = vand.u32 2147483648, %v154_v18  ;;  %v164_v24 = vand.u32 2147483647, %v154_v18  ;;  %vm160_vm6 = vweird.f32 %v154_v18 }
 0x152   :  { %v167_v26 = vor.u32 1.1754944e-38, %v166_v22  ;;  %vm165_vm8 = vcmp.eq.f32.partialorder %v164_v24, 8.507059e+37 }
 0x156   :  { %v215_v19 = vpop.eup %214 }
 0x157   :  { %v156_v20 = vmul.f32 %v215_v19, %v154_v18  ;;  %vm161_vm5 = vweird.f32 %v215_v19 }
 0x158   :  { %vm162_vm7 = vmor %vm160_vm6, %vm161_vm5 }
 0x159   :  { %v157_v21 = vsub.f32 1.0, %v156_v20 }
 0x15b   :  { %v158_v23 = vmul.f32 %v215_v19, %v157_v21 }
 0x15d   :  { %v159_v25 = vadd.f32 %v215_v19, %v158_v23 }
 0x15f   :  { %v163_v27 = vsel %vm162_vm7, %v215_v19, %v159_v25 }
 0x160   :  { %v168_v28 = vsel %vm165_vm8, %v167_v26, %v163_v27 }
 0x161   :  { %196 = vpush %v168_v28 }
 0x192   :  { %s197_s30 = spop %196 }
 0x193   :  { %s170_s4 = smul.f32 %s197_s30, %s193_s0 }
 0x195   :  { %172 = sst [smem:[#allocation7]] %s170_s4 }
 0x196   :  { %181 = dma.smem_to_hbm %s261_s5, 16, %s179_s29, [#allocation6]  }
 0x197   :  { %254 = dma.done.wait [#allocation6], 16  }
 0x198   :  { %255 = vsyncadd [#allocation6], 4294967280 }
 0x199   :  { %186 = sfence }
 0x19a   :  { %187 = vsyncpa [#allocation5], 1 }
 0x19b   :  { %188 = vsyncpa [#allocation6], 1 }

</bundles_post_ra>
